<compile_context>
chip_gen: v7x
topology: tpu7x:2x2x1
jax: 0.10.0
libtpu: 0.0.40
codegen_flags: <defaults>
</compile_context>

<pallas_src>
import jax
import jax.numpy as jnp
from jax.experimental import pallas as pl
from jax.experimental.pallas import tpu as pltpu

# ---- static problem sizes (small, everything fits in VMEM) -------------------
B = 2            # graphs in the batch
N = 8            # nodes per graph
NODE_DIM = 32    # node feature dim
EDGE_DIM = 16    # edge feature dim
EXP = -2.0       # self.exp buffer default (implemented as reciprocal**2 below)
EPS = 0.0        # self.eps buffer default


# ------------------------------- the kernel -----------------------------------
def rr_graph_conv_kernel(h_ref, e_ref, r_ref, m_ref,
                         w_node_ref, w_edge_ref, b_ref, sel_ref, out_ref):
    D = NODE_DIM
    h2 = h_ref[...]                          # (B*N, D)      row = (b, node)
    e2 = e_ref[...]                          # (B*N*N, De)   row = (b, dst, src)
    r2 = r_ref[...]                          # (B*N, N)      row = (b, dst), col = src
    m2 = m_ref[...]                          # (B*N, N)

    # Fused node projection: [src_v|src_g|dst_v|dst_g] in one (D, 4D) = (32, 128) matmul (#2).
    zn = jnp.dot(h2, w_node_ref[...],
                 preferred_element_type=jnp.float32) + b_ref[...]       # (B*N, 4D)
    zs = zn[:, :2 * D]                       # src-segment projection (+ bias), (B*N, 2D)
    zd = zn[:, 2 * D:]                       # dst-segment projection,          (B*N, 2D)

    # Edge projection on pre-flattened pair rows (#1, #5): (B*N*N, De) @ (De, 2D).
    ze = jnp.dot(e2, w_edge_ref[...],
                 preferred_element_type=jnp.float32)                    # (B*N*N, 2D)

    # Combine per (b, dst, src) pair. Only leading-dim reshapes (last dim untouched).
    z = (ze.reshape(B, N, N, 2 * D)
         + zs.reshape(B, 1, N, 2 * D)        # indexed by src, broadcast over dst
         + zd.reshape(B, N, 1, 2 * D))       # indexed by dst, broadcast over src
    msg = z[..., :D] * jax.nn.sigmoid(z[..., D:])                       # GLU, (B, N, N, D)

    # Edge weight r**EXP with EXP = -2, only on existing edges (#4). Masked r avoids 1/0.
    r_safe = jnp.where(m2 > 0.0, r2, 1.0)
    inv = pl.reciprocal(r_safe, approx=False)
    w2 = m2 * inv * inv                                                  # (B*N, N)

    wmsg = w2.reshape(B, N, N)[:, :, :, None] * msg                      # (B, N, N, D)

    # Sum over src as an MXU contraction with a block-diagonal 0/1 selector (#6):
    # sel[q, p] = 1 iff p // N == q, so agg[q] = sum_src wmsg[b, dst, src] with q = b*N + dst.
    agg = jnp.dot(sel_ref[...], wmsg.reshape(B * N * N, D),
                  preferred_element_type=jnp.float32)                    # (B*N, D)

    # DGL degree-bucketed UDF reduce skips zero in-degree nodes: they keep '_h' = feat_dst.
    deg = jnp.sum(m2, axis=1, keepdims=True)                             # (B*N, 1) in-degree
    agg = jnp.where(deg > 0.0, agg, h2)

    out_ref[...] = (1.0 + EPS) * h2 + agg


# ------------------------------ python wrapper ---------------------------------
def rr_graph_conv_forward(node_feat, edge_feat, radius, mask, w_v, b_v, w_g, b_g):
    D, De = NODE_DIM, EDGE_DIM

    # Fuse value/gate into one (2D+De, 2D) weight, split by concat segment [src | edge | dst],
    # then fuse the two node segments into a single lane-full (D, 4D) matrix (#2).
    w_full = jnp.concatenate([w_v, w_g], axis=1)                  # (2D+De, 2D)
    w_src, w_edge, w_dst = w_full[:D], w_full[D:D + De], w_full[D + De:]
    w_node = jnp.concatenate([w_src, w_dst], axis=1)              # (D, 4D) = (32, 128)
    bias = jnp.concatenate(
        [b_v, b_g, jnp.zeros((2 * D,), w_v.dtype)]).reshape(1, 4 * D)   # bias only on src half

    # Block-diagonal src-sum selector for the MXU aggregation (#6): (B*N, B*N*N).
    sel = jnp.kron(jnp.eye(B * N, dtype=jnp.float32), jnp.ones((1, N), jnp.float32))

    # Collapse the batch into the row dimension with XLA-side reshapes (#1, #5).
    h2 = node_feat.reshape(B * N, D)
    e2 = edge_feat.reshape(B * N * N, De)
    r2 = radius.reshape(B * N, N)
    m2 = mask.reshape(B * N, N)

    # Single invocation, no grid: every array (<100 KB total) is whole-array VMEM-resident.
    vmem = pl.BlockSpec(memory_space=pltpu.MemorySpace.VMEM)
    out2 = pl.pallas_call(
        rr_graph_conv_kernel,
        out_shape=jax.ShapeDtypeStruct((B * N, D), jnp.float32),
        in_specs=[vmem] * 8,
        out_specs=vmem,
    )(h2, e2, r2, m2, w_node, w_edge, bias, sel)
    return out2.reshape(B, N, D)


# --------------------------- pure-JAX reference --------------------------------
def rr_graph_conv_reference(node_feat, edge_feat, radius, mask, w_v, b_v, w_g, b_g):
    h_src = jnp.broadcast_to(node_feat[:, None, :, :], (B, N, N, NODE_DIM))  # [b,dst,src] = h[src]
    h_dst = jnp.broadcast_to(node_feat[:, :, None, :], (B, N, N, NODE_DIM))  # [b,dst,src] = h[dst]
    x = jnp.concatenate([h_src, edge_feat, h_dst], axis=-1)                  # (B,N,N,2D+De)
    val = x @ w_v + b_v
    gate = x @ w_g + b_g
    msg = val * jax.nn.sigmoid(gate)
    r_safe = jnp.where(mask > 0.0, radius, 1.0)
    w = mask * jnp.exp(jnp.log(r_safe) * EXP)
    agg = jnp.sum(w[..., None] * msg, axis=2)                                # sum over src
    deg = jnp.sum(mask, axis=2, keepdims=True)
    agg = jnp.where(deg > 0.0, agg, node_feat)
    return (1.0 + EPS) * node_feat + agg


# ------------------------------------ main --------------------------------------
if __name__ == "__main__":
    key = jax.random.PRNGKey(0)
    keys = jax.random.split(key, 8)

    node_feat = jax.random.normal(keys[0], (B, N, NODE_DIM), jnp.float32)
    edge_feat = jax.random.normal(keys[1], (B, N, N, EDGE_DIM), jnp.float32)
    radius = jax.random.uniform(keys[2], (B, N, N), jnp.float32, minval=0.5, maxval=2.0)
    mask = jax.random.bernoulli(keys[3], 0.5, (B, N, N))
    mask = jnp.where(jnp.eye(N, dtype=bool)[None], False, mask).astype(jnp.float32)  # no self loops

    scale = 0.1
    din = 2 * NODE_DIM + EDGE_DIM
    # GatedLinearUnit parameters, pre-transposed to (in, out).
    w_v = jax.random.normal(keys[4], (din, NODE_DIM), jnp.float32) * scale
    b_v = jax.random.normal(keys[5], (NODE_DIM,), jnp.float32) * scale
    w_g = jax.random.normal(keys[6], (din, NODE_DIM), jnp.float32) * scale
    b_g = jax.random.normal(keys[7], (NODE_DIM,), jnp.float32) * scale

    out = rr_graph_conv_forward(node_feat, edge_feat, radius, mask, w_v, b_v, w_g, b_g)
    out = jax.block_until_ready(out)

    ref = rr_graph_conv_reference(node_feat, edge_feat, radius, mask, w_v, b_v, w_g, b_g)

    assert out.shape == (B, N, NODE_DIM), out.shape
    assert bool(jnp.all(jnp.isfinite(out)))
    max_err = float(jnp.max(jnp.abs(out - ref)))
    assert max_err < 1e-3, max_err
    print("KERNEL_OK")
</pallas_src>

<mosaic_0001>
module attributes {stable_mosaic.version = 11 : i64} {
  func.func @rr_graph_conv_kernel(%arg0: memref<16x32xf32, #tpu.memory_space<vmem>>, %arg1: memref<128x16xf32, #tpu.memory_space<vmem>>, %arg2: memref<16x8xf32, #tpu.memory_space<vmem>>, %arg3: memref<16x8xf32, #tpu.memory_space<vmem>>, %arg4: memref<32x128xf32, #tpu.memory_space<vmem>>, %arg5: memref<16x64xf32, #tpu.memory_space<vmem>>, %arg6: memref<1x128xf32, #tpu.memory_space<vmem>>, %arg7: memref<16x128xf32, #tpu.memory_space<vmem>>, %arg8: memref<16x32xf32, #tpu.memory_space<vmem>>) attributes {dimension_semantics = [], scalar_prefetch = 0 : i64, scratch_operands = 0 : i64, tpu.core_type = #tpu.core_type<tc>} {
    %c0 = arith.constant 0 : index
    %c0_0 = arith.constant 0 : index
    %0 = vector.load %arg0[%c0, %c0_0] : memref<16x32xf32, #tpu.memory_space<vmem>>, vector<16x32xf32>
    %c0_1 = arith.constant 0 : index
    %c0_2 = arith.constant 0 : index
    %1 = vector.load %arg1[%c0_1, %c0_2] : memref<128x16xf32, #tpu.memory_space<vmem>>, vector<128x16xf32>
    %c0_3 = arith.constant 0 : index
    %c0_4 = arith.constant 0 : index
    %2 = vector.load %arg2[%c0_3, %c0_4] : memref<16x8xf32, #tpu.memory_space<vmem>>, vector<16x8xf32>
    %c0_5 = arith.constant 0 : index
    %c0_6 = arith.constant 0 : index
    %3 = vector.load %arg3[%c0_5, %c0_6] : memref<16x8xf32, #tpu.memory_space<vmem>>, vector<16x8xf32>
    %c0_7 = arith.constant 0 : index
    %c0_8 = arith.constant 0 : index
    %4 = vector.load %arg4[%c0_7, %c0_8] : memref<32x128xf32, #tpu.memory_space<vmem>>, vector<32x128xf32>
    %cst = arith.constant dense<0.000000e+00> : vector<16x128xf32>
    %5 = tpu.matmul %0, %4, %cst {dimension_numbers = #tpu.dot_dimension_numbers<[1], [0], [0], [1], [0, 0, 1, 1], [], []>} : vector<16x32xf32>, vector<32x128xf32>, vector<16x128xf32> -> vector<16x128xf32>
    %c0_9 = arith.constant 0 : index
    %c0_10 = arith.constant 0 : index
    %6 = vector.load %arg6[%c0_9, %c0_10] : memref<1x128xf32, #tpu.memory_space<vmem>>, vector<1x128xf32>
    %7 = vector.broadcast %6 : vector<1x128xf32> to vector<16x128xf32>
    %8 = arith.addf %5, %7 : vector<16x128xf32>
    %9 = vector.extract_strided_slice %8 {offsets = [0, 0], sizes = [16, 64], strides = [1, 1]} : vector<16x128xf32> to vector<16x64xf32>
    %10 = vector.extract_strided_slice %8 {offsets = [0, 64], sizes = [16, 64], strides = [1, 1]} : vector<16x128xf32> to vector<16x64xf32>
    %c0_11 = arith.constant 0 : index
    %c0_12 = arith.constant 0 : index
    %11 = vector.load %arg5[%c0_11, %c0_12] : memref<16x64xf32, #tpu.memory_space<vmem>>, vector<16x64xf32>
    %cst_13 = arith.constant dense<0.000000e+00> : vector<128x64xf32>
    %12 = tpu.matmul %1, %11, %cst_13 {dimension_numbers = #tpu.dot_dimension_numbers<[1], [0], [0], [1], [0, 0, 1, 1], [], []>} : vector<128x16xf32>, vector<16x64xf32>, vector<128x64xf32> -> vector<128x64xf32>
    %13 = vector.shape_cast %12 : vector<128x64xf32> to vector<2x8x8x64xf32>
    %14 = vector.shape_cast %9 : vector<16x64xf32> to vector<2x1x8x64xf32>
    %15 = vector.broadcast %14 : vector<2x1x8x64xf32> to vector<2x8x8x64xf32>
    %16 = arith.addf %13, %15 : vector<2x8x8x64xf32>
    %17 = vector.shape_cast %10 : vector<16x64xf32> to vector<2x8x1x64xf32>
    %18 = vector.broadcast %17 : vector<2x8x1x64xf32> to vector<2x8x8x64xf32>
    %19 = arith.addf %16, %18 : vector<2x8x8x64xf32>
    %20 = vector.extract_strided_slice %19 {offsets = [0, 0, 0, 0], sizes = [2, 8, 8, 32], strides = [1, 1, 1, 1]} : vector<2x8x8x64xf32> to vector<2x8x8x32xf32>
    %21 = vector.extract_strided_slice %19 {offsets = [0, 0, 0, 32], sizes = [2, 8, 8, 32], strides = [1, 1, 1, 1]} : vector<2x8x8x64xf32> to vector<2x8x8x32xf32>
    %22 = arith.negf %21 : vector<2x8x8x32xf32>
    %23 = math.exp %22 : vector<2x8x8x32xf32>
    %cst_14 = arith.constant 1.000000e+00 : f32
    %24 = vector.broadcast %cst_14 : f32 to vector<2x8x8x32xf32>
    %25 = arith.addf %24, %23 : vector<2x8x8x32xf32>
    %26 = arith.divf %24, %25 : vector<2x8x8x32xf32>
    %27 = arith.mulf %20, %26 : vector<2x8x8x32xf32>
    %cst_15 = arith.constant 0.000000e+00 : f32
    %28 = vector.broadcast %cst_15 : f32 to vector<16x8xf32>
    %29 = arith.cmpf ogt, %3, %28 : vector<16x8xf32>
    %cst_16 = arith.constant 1.000000e+00 : f32
    %30 = vector.broadcast %cst_16 : f32 to vector<16x8xf32>
    %31 = arith.select %29, %2, %30 : vector<16x8xi1>, vector<16x8xf32>
    %32 = tpu.reciprocal %31 : vector<16x8xf32> -> vector<16x8xf32>
    %33 = arith.mulf %3, %32 : vector<16x8xf32>
    %34 = arith.mulf %33, %32 : vector<16x8xf32>
    %35 = vector.shape_cast %34 : vector<16x8xf32> to vector<2x8x8xf32>
    %36 = vector.shape_cast %35 : vector<2x8x8xf32> to vector<2x8x8x1xf32>
    %37 = vector.broadcast %36 : vector<2x8x8x1xf32> to vector<2x8x8x32xf32>
    %38 = arith.mulf %37, %27 : vector<2x8x8x32xf32>
    %c0_17 = arith.constant 0 : index
    %c0_18 = arith.constant 0 : index
    %39 = vector.load %arg7[%c0_17, %c0_18] : memref<16x128xf32, #tpu.memory_space<vmem>>, vector<16x128xf32>
    %40 = vector.shape_cast %38 : vector<2x8x8x32xf32> to vector<128x32xf32>
    %cst_19 = arith.constant dense<0.000000e+00> : vector<16x32xf32>
    %41 = tpu.matmul %39, %40, %cst_19 {dimension_numbers = #tpu.dot_dimension_numbers<[1], [0], [0], [1], [0, 0, 1, 1], [], []>} : vector<16x128xf32>, vector<128x32xf32>, vector<16x32xf32> -> vector<16x32xf32>
    %cst_20 = arith.constant dense<0.000000e+00> : vector<16xf32>
    %42 = vector.multi_reduction <add>, %3, %cst_20 [1] : vector<16x8xf32> to vector<16xf32>
    %43 = vector.shape_cast %42 : vector<16xf32> to vector<16x1xf32>
    %cst_21 = arith.constant 0.000000e+00 : f32
    %44 = vector.broadcast %cst_21 : f32 to vector<16x1xf32>
    %45 = arith.cmpf ogt, %43, %44 : vector<16x1xf32>
    %46 = vector.shape_cast %45 : vector<16x1xi1> to vector<16x1xi1>
    %47 = vector.broadcast %46 : vector<16x1xi1> to vector<16x32xi1>
    %48 = arith.select %47, %41, %0 : vector<16x32xi1>, vector<16x32xf32>
    %cst_22 = arith.constant 1.000000e+00 : f32
    %49 = vector.broadcast %cst_22 : f32 to vector<16x32xf32>
    %50 = arith.mulf %49, %0 : vector<16x32xf32>
    %51 = arith.addf %50, %48 : vector<16x32xf32>
    %c0_23 = arith.constant 0 : index
    %c0_24 = arith.constant 0 : index
    %52 = vector.load %arg8[%c0_23, %c0_24] : memref<16x32xf32, #tpu.memory_space<vmem>>, vector<16x32xf32>
    tpu.vector_store %arg8[%c0_23, %c0_24], %51 {strides = array<i32>} : memref<16x32xf32, #tpu.memory_space<vmem>>, vector<16x32xf32>,
    return
  }
}

</mosaic_0001>

<bundles_post_ra>
// kernel: tpu_custom_call.1
= control target key start
LH: loop header
LB: loop body
LE: loop exit
PB: predicated region body
PF: predicated region fallthrough
CT: control target
= control target key end

     0   :  { %vm147_vm0 = vcmask 130048   ;;  %vm63_vm1 = vcmask 261120   ;;  %s1707_s0 = inlined_call_operand.vmem [shape: f32[16,32], index: 0, kind: input, shape index: {}]   ;;  %s1708_s1 = inlined_call_operand.vmem [shape: f32[128,16], index: 1, kind: input, shape index: {}]   ;;  %s1709_s2 = inlined_call_operand.vmem [shape: f32[16,8], index: 2, kind: input, shape index: {}]   ;;  %s1710_s3 = inlined_call_operand.vmem [shape: f32[16,8], index: 3, kind: input, shape index: {}]   ;;  %s1711_s4 = inlined_call_operand.vmem [shape: f32[32,128], index: 4, kind: input, shape index: {}]   ;;  %s1712_s5 = inlined_call_operand.vmem [shape: f32[16,64], index: 5, kind: input, shape index: {}]   ;;  %s1713_s6 = inlined_call_operand.vmem [shape: f32[1,128], index: 6, kind: input, shape index: {}]   ;;  %s1714_s7 = inlined_call_operand.vmem [shape: f32[16,128], index: 7, kind: input, shape index: {}]   ;;  %s1715_s8 = inlined_call_operand.hbm [shape: f32[16,32], index: 8, kind: output, shape index: {}]  }
   0x1   :  { %v52_v0 = vld [vmem:[%s1711_s4] sm:$0xff]  ;;  %v53_v1 = vld [vmem:[%s1711_s4 + $0x8] sm:$0xff]  ;;  %v54_v6 = vld [vmem:[%s1711_s4 + $0x10] sm:$0xff] }
   0x2   :  { %v145_v2 = vld [vmem:[%s1712_s5] sm:$0xff]  ;;  %v1162_v3 = vpack.c.bf16 %v53_v1, %v52_v0  ;;  %v146_v4 = vld [vmem:[%s1712_s5 + $0x8] sm:$0xff]  ;;  %v55_v8 = vld [vmem:[%s1711_s4 + $0x18] sm:$0xff] }
   0x3   :  { %v32_v5 = vld [vmem:[%s1708_s1] sm:$0xff]  ;;  %v1170_v7 = vpack.c.bf16 %v146_v4, %v145_v2  ;;  %v1166_v10 = vpack.c.bf16 %v55_v8, %v54_v6  ;;  %v33_v11 = vld [vmem:[%s1708_s1 + $0x8] sm:$0xff]  ;;  %v34_v12 = vld [vmem:[%s1708_s1 + $0x10] sm:$0xff] }
   0x4   :  { %1103 = vmatprep.mubr.msk.f32.mxu1 %vm147_vm0, %v32_v5  ;;  %v1380_v9 = vld [vmem:[%s1707_s0] sm:$0xff]  ;;  %1163 = vmatprep.subr.bf16.mxu0 %v1162_v3  ;;  %v1394_v13 = vld [vmem:[%s1707_s0 + $0x8] sm:$0xff] }
   0x5   :  { %1096 = vmatprep.mubr.msk.f32.mxu0 %vm63_vm1, %v1380_v9  ;;  %1171 = vmatprep.subr.bf16.mxu1 %v1170_v7 }
   0x6   :  { %1165 = vmatpush3.bf16.msra.mxu0 %v1162_v3  ;;  %1173 = vmatpush3.bf16.msra.mxu1 %v1170_v7 }
   0x7   :  { %1167 = vmatprep.subr.bf16.mxu0 %v1166_v10 }
   0x9   :  { %1104 = vmatmul.mubr.msk.f32.vlgmr.msra.gmra.mrb[0].mxu1 %vm147_vm0, %v33_v11 }
   0xa   :  { %1169 = vmatpush3.bf16.msra.mxu0 %v1166_v10 }
   0xb   :  { %13 = vsyncpa [#allocation3], 0  ;;  %1106 = vmatprep.mubr.msk.f32.mxu1 %vm147_vm0, %v34_v12  ;;  %v35_v14 = vld [vmem:[%s1708_s1 + $0x18] sm:$0xff]  ;;  %v36_v15 = vld [vmem:[%s1708_s1 + $0x20] sm:$0xff]  ;;  %v1304_v27 = vmov 1966171168   ;;  %v363_v29 = vlaneseq }
   0xc   :  { %v37_v16 = vld [vmem:[%s1708_s1 + $0x28] sm:$0xff]  ;;  %v38_v17 = vld [vmem:[%s1708_s1 + $0x30] sm:$0xff]  ;;  %v39_v18 = vld [vmem:[%s1708_s1 + $0x38] sm:$0xff]  ;;  %v361_v28 = vunpack.c.l.s4 %v1304_v27  ;;  %vm976_vm4 = vcmask 64512   ;;  %s1307_s15 = smov [#allocation2]  }
   0xd   :  { %1097 = vmatmul.mubr.msk.f32.vlgmr.msra.gmra.mrb[0].mxu0 %vm63_vm1, %v1394_v13  ;;  %1107 = vmatmul.mubr.msk.f32.gmra.mrb[2].mxu1 %vm147_vm0, %v35_v14  ;;  %v40_v19 = vld [vmem:[%s1708_s1 + $0x40] sm:$0xff]  ;;  %v41_v20 = vld [vmem:[%s1708_s1 + $0x48] sm:$0xff]  ;;  %v42_v21 = vld [vmem:[%s1708_s1 + $0x50] sm:$0xff]  ;;  %v1451_v31 = vshrl.u32 %v363_v29, 7  ;;  %s1000_s16 = sshll.u32 %s1307_s15, 4  ;;  %s1001_s16 = int_to_ptr.vmem [resolvable:$true] %s1000_s16 }
   0xe   :  { %1109 = vmatprep.mubr.msk.f32.mxu1 %vm147_vm0, %v36_v15  ;;  %v43_v22 = vld [vmem:[%s1708_s1 + $0x58] sm:$0xff]  ;;  %v44_v23 = vld [vmem:[%s1708_s1 + $0x60] sm:$0xff]  ;;  %v45_v24 = vld [vmem:[%s1708_s1 + $0x68] sm:$0xff]  ;;  %v362_v30 = vunpack.c.0.s8 %v361_v28  ;;  %p1285_p1 = scmp.lt.s32.totalorder %s1001_s16, %s1001_s16 }
   0xf   :  { %v46_v25 = vld [vmem:[%s1708_s1 + $0x70] sm:$0xff]  ;;  %v47_v26 = vld [vmem:[%s1708_s1 + $0x78] sm:$0xff]  ;;  %v1011_v34 = vld [vmem:[%s1713_s6] ss:$0 sm:$0xff]  ;;  %v1460_v41 = vsub.s32 0, %v1451_v31  ;;  %s1305_s1 = smov 64  }
  0x10   :  { %v1457_v36 = vsub.s32 %v362_v30, %v1451_v31  ;;  %v1488_v2 = vld [vmem:[%s1710_s3] sm:$0xff] }
  0x11   :  { %1110 = vmatmul.mubr.msk.f32.gmra.mrb[4].mxu1 %vm147_vm0, %v37_v16  ;;  %v48_v5 = vld [vmem:[%s1709_s2] sm:$0xff]  ;;  %vm761_vm2 = vcmp.gt.f32.partialorder %v1488_v2, 0.0 }
  0x12   :  { %1112 = vmatprep.mubr.msk.f32.mxu1 %vm147_vm0, %v38_v17  ;;  %v763_v15 = vsel %vm761_vm2, %v48_v5, 1.0 }
  0x13   :  { %1212 = vrcp.f32 %v763_v15  ;;  %v794_v15 = vsub.s32 3, %v1451_v31 }
  0x15   :  { %1113 = vmatmul.mubr.msk.f32.gmra.mrb[6].mxu1 %vm147_vm0, %v39_v18 }
  0x16   :  { %1115 = vmatprep.mubr.msk.f32.mxu1 %vm147_vm0, %v40_v19 }
  0x19   :  { %1116 = vmatmul.mubr.msk.f32.gmra.mrb[8].mxu1 %vm147_vm0, %v41_v20 }
  0x1a   :  { %1118 = vmatprep.mubr.msk.f32.mxu1 %vm147_vm0, %v42_v21 }
  0x1d   :  { %1119 = vmatmul.mubr.msk.f32.gmra.mrb[10].mxu1 %vm147_vm0, %v43_v22 }
  0x1e   :  { %1121 = vmatprep.mubr.msk.f32.mxu1 %vm147_vm0, %v44_v23 }
  0x21   :  { %1122 = vmatmul.mubr.msk.f32.gmra.mrb[12].mxu1 %vm147_vm0, %v45_v24 }
  0x22   :  { %1124 = vmatprep.mubr.msk.f32.mxu1 %vm147_vm0, %v46_v25 }
  0x25   :  { %1125 = vmatmul.mubr.msk.f32.gmra.mrb[14].mxu1 %vm147_vm0, %v47_v26 }
  0xdc   :  { %v1105_v32 = vpop.f32.mrb[0].mxu1 }
  0xdd   :  { %v262_v33 = vpop.f32.mrb[1].mxu1 }
  0xe0   :  { %v1098_v35 = vpop.f32.mrb[0].mxu0  ;;  %v1108_v38 = vpop.f32.mrb[2].mxu1 }
  0xe1   :  { %v136_v37 = vpop.f32.mrb[1].mxu0  ;;  %v272_v40 = vpop.f32.mrb[3].mxu1  ;;  %v142_v58 = vadd.f32 %v1098_v35, %v1011_v34 }
  0xe2   :  { %v137_v39 = vadd.f32 %v1011_v34, %v136_v37 }
  0xe3   :  { %v415_v7 = vrot.slane %v142_v58, %v1457_v36  ;;  %v408_v19 = vcombine.high %v142_v58, %v142_v58 }
  0xe4   :  { %v1462_v42 = vadd.f32 %v262_v33, %v137_v39  ;;  %v1464_v43 = vadd.f32 %v1108_v38, %v137_v39  ;;  %v1466_v44 = vadd.f32 %v272_v40, %v137_v39  ;;  %v366_v45 = vrot.slane %v137_v39, %v1457_v36  ;;  %v1111_v46 = vpop.f32.mrb[4].mxu1 }
  0xe5   :  { %v359_v47 = vcombine.high %v137_v39, %v137_v39  ;;  %v1469_v48 = vadd.f32 %v1111_v46, %v137_v39  ;;  %v282_v49 = vpop.f32.mrb[5].mxu1  ;;  %v1472_v52 = vadd.f32 %v1105_v32, %v137_v39  ;;  %v423_v24 = vcombine.high %v415_v7, %v415_v7 }
  0xe6   :  { %v382_v50 = vrot.slane %v366_v45, %v1457_v36  ;;  %v374_v51 = vcombine.high %v366_v45, %v366_v45  ;;  %v1474_v53 = vadd.f32 %v282_v49, %v137_v39  ;;  %v431_v27 = vrot.slane %v415_v7, %v1457_v36 }
  0xe7   :  { %v373_v54 = vrot.slane %v359_v47, %v1457_v36  ;;  %v445_v33 = vrot.slane %v423_v24, %v1457_v36  ;;  %v422_v34 = vrot.slane %v408_v19, %v1457_v36 }
  0xe8   :  { %v460_v55 = vrot.slane %v382_v50, %v1460_v41  ;;  %v404_v56 = vcombine.high %v382_v50, %v382_v50  ;;  %v396_v57 = vrot.slane %v374_v51, %v1457_v36  ;;  %v1114_v59 = vpop.f32.mrb[6].mxu1  ;;  %v492_v37 = vrot.slane %v431_v27, %v1460_v41  ;;  %v1213_v51 = vpop.eup %1212 }
  0xe9   :  { %v1479_v60 = vadd.f32 %v1114_v59, %v137_v39  ;;  %v292_v61 = vpop.f32.mrb[7].mxu1  ;;  %v375_v0 = vcombine.high %v373_v54, %v373_v54  ;;  %v389_v4 = vrot.slane %v373_v54, %v1457_v36  ;;  %v453_v38 = vcombine.high %v431_v27, %v431_v27 }
  0xea   :  { %521 = vrot.lane.b32.xlu0 %v460_v55, %s1305_s1  ;;  %v468_v62 = vrot.slane %v404_v56, %v1460_v41  ;;  %v406_v63 = vcombine.high %v396_v57, %v396_v57  ;;  %v1483_v1 = vadd.f32 %v292_v61, %v137_v39  ;;  %v464_v3 = vrot.slane %v396_v57, %v1460_v41  ;;  %v1529_v39 = vld [vmem:[%s1710_s3 + $0x8] sm:$0xff] }
  0xeb   :  { %v403_v12 = vrot.slane %v375_v0, %v1457_v36  ;;  %v476_v16 = vrot.slane %v389_v4, %v1460_v41  ;;  %v405_v17 = vcombine.high %v389_v4, %v389_v4  ;;  %v496_v47 = vrot.slane %v445_v33, %v1460_v41  ;;  %v49_v55 = vld [vmem:[%s1709_s2 + $0x8] sm:$0xff]  ;;  %s1306_s2 = smov 96  }
  0xec   :  { %525 = vrot.lane.b32.xlu1 %v468_v62, %s1305_s1  ;;  %v1117_v6 = vpop.f32.mrb[8].mxu1  ;;  %v472_v11 = vrot.slane %v406_v63, %v1460_v41  ;;  %v455_v49 = vcombine.high %v445_v33, %v445_v33  ;;  %v424_v50 = vcombine.high %v422_v34, %v422_v34  ;;  %vm762_vm3 = vcmp.gt.f32.partialorder %v1529_v39, 0.0 }
  0xed   :  { %v1497_v8 = vadd.f32 %v1117_v6, %v142_v58  ;;  %v302_v10 = vpop.f32.mrb[9].mxu1  ;;  %v480_v22 = vrot.slane %v403_v12, %v1460_v41  ;;  %v407_v23 = vcombine.high %v403_v12, %v403_v12  ;;  %v484_v26 = vrot.slane %v405_v17, %v1460_v41 }
  0xee   :  { %523 = vrot.lane.b32.xlu0 %v464_v3, %s1305_s1  ;;  %v1503_v14 = vadd.f32 %v302_v10, %v142_v58  ;;  %v500_v56 = vrot.slane %v453_v38, %v1460_v41  ;;  %v438_v57 = vrot.slane %v422_v34, %v1457_v36  ;;  %v504_v59 = vrot.slane %v455_v49, %v1460_v41 }
  0xef   :  { %v488_v32 = vrot.slane %v407_v23, %v1460_v41  ;;  %v452_v61 = vrot.slane %v424_v50, %v1457_v36  ;;  %v764_v62 = vsel %vm762_vm3, %v49_v55, 1.0  ;;  %v780_v36 = vsub.s32 1, %v1451_v31 }
  0xf0   :  { %527 = vrot.lane.b32.xlu1 %v472_v11, %s1305_s1  ;;  %v1120_v18 = vpop.f32.mrb[10].mxu1  ;;  %v508_v63 = vrot.slane %v438_v57, %v1460_v41  ;;  %v454_v0 = vcombine.high %v438_v57, %v438_v57  ;;  %1214 = vrcp.f32 %v764_v62  ;;  %v787_v11 = vsub.s32 2, %v1451_v31 }
  0xf1   :  { %v1507_v20 = vadd.f32 %v1120_v18, %v142_v58  ;;  %v312_v21 = vpop.f32.mrb[11].mxu1  ;;  %v512_v3 = vrot.slane %v452_v61, %v1460_v41  ;;  %v456_v4 = vcombine.high %v452_v61, %v452_v61  ;;  %v801_v17 = vsub.s32 4, %v1451_v31 }
  0xf2   :  { %529 = vrot.lane.b32.xlu0 %v476_v16, %s1305_s1  ;;  %v1511_v25 = vadd.f32 %v312_v21, %v142_v58  ;;  %v516_v6 = vrot.slane %v454_v0, %v1460_v41  ;;  %v808_v21 = vsub.s32 5, %v1451_v31  ;;  %v815_v23 = vsub.s32 6, %v1451_v31 }
  0xf3   :  { %v520_v7 = vrot.slane %v456_v4, %v1460_v41  ;;  %v822_v27 = vsub.s32 7, %v1451_v31 }
  0xf4   :  { %531 = vrot.lane.b32.xlu1 %v480_v22, %s1305_s1  ;;  %v1123_v28 = vpop.f32.mrb[12].mxu1 }
  0xf5   :  { %v1516_v29 = vadd.f32 %v1123_v28, %v142_v58  ;;  %v322_v30 = vpop.f32.mrb[13].mxu1 }
  0xf6   :  { %533 = vrot.lane.b32.xlu0 %v484_v26, %s1305_s1  ;;  %v1522_v35 = vadd.f32 %v322_v30, %v142_v58 }
  0xf8   :  { %535 = vrot.lane.b32.xlu1 %v488_v32, %s1305_s1  ;;  %v1126_v40 = vpop.f32.mrb[14].mxu1 }
  0xf9   :  { %v1531_v45 = vadd.f32 %v1126_v40, %v142_v58  ;;  %v332_v46 = vpop.f32.mrb[15].mxu1 }
  0xfa   :  { %537 = vrot.lane.b32.xlu0 %v492_v37, %s1305_s1  ;;  %v1535_v54 = vadd.f32 %v332_v46, %v142_v58  ;;  %v767_v58 = vmul.f32 %v1213_v51, %v1488_v2  ;;  %v1215_v18 = vpop.eup %1214 }
  0xfb   :  { %v768_v24 = vmul.f32 %v1215_v18, %v1529_v39 }
  0xfc   :  { %539 = vrot.lane.b32.xlu1 %v496_v47, %s1305_s1  ;;  %v769_v5 = vmul.f32 %v1213_v51, %v767_v58 }
  0xfd   :  { %v770_v30 = vmul.f32 %v1215_v18, %v768_v24 }
  0xfe   :  { %541 = vrot.lane.b32.xlu0 %v500_v56, %s1305_s1  ;;  %v774_v10 = vrot.slane %v769_v5, %v1460_v41  ;;  %v781_v12 = vrot.slane %v769_v5, %v780_v36  ;;  %v788_v16 = vrot.slane %v769_v5, %v787_v11  ;;  %v795_v19 = vrot.slane %v769_v5, %v794_v15 }
  0xff   :  { %v802_v22 = vrot.slane %v769_v5, %v801_v17  ;;  %v809_v26 = vrot.slane %v769_v5, %v808_v21  ;;  %v816_v28 = vrot.slane %v769_v5, %v815_v23  ;;  %v823_v32 = vrot.slane %v769_v5, %v822_v27 }
 0x100   :  { %543 = vrot.lane.b32.xlu1 %v504_v59, %s1305_s1  ;;  %v830_v33 = vrot.slane %v770_v30, %v1460_v41  ;;  %v837_v34 = vrot.slane %v770_v30, %v780_v36  ;;  %v1567_v37 = vrot.slane %v770_v30, %v787_v11  ;;  %v1569_v38 = vrot.slane %v770_v30, %v794_v15 }
 0x101   :  { %v1571_v40 = vrot.slane %v770_v30, %v801_v17  ;;  %v1573_v46 = vrot.slane %v770_v30, %v808_v21  ;;  %v1575_v31 = vrot.slane %v770_v30, %v815_v23  ;;  %v1577_v47 = vrot.slane %v770_v30, %v822_v27 }
 0x102   :  { %545 = vrot.lane.b32.xlu0 %v508_v63, %s1305_s1 }
 0x104   :  { %547 = vrot.lane.b32.xlu1 %v512_v3, %s1305_s1 }
 0x106   :  { %549 = vrot.lane.b32.xlu0 %v516_v6, %s1305_s1 }
 0x108   :  { %551 = vrot.lane.b32.xlu1 %v520_v7, %s1305_s1 }
 0x10a   :  { %776 = vbcast.lane.b32.xlu0 %v774_v10, 256 }
 0x10c   :  { %783 = vbcast.lane.b32.xlu1 %v781_v12, 256 }
 0x10e   :  { %790 = vbcast.lane.b32.xlu0 %v788_v16, 256 }
 0x110   :  { %797 = vbcast.lane.b32.xlu1 %v795_v19, 256 }
 0x112   :  { %804 = vbcast.lane.b32.xlu0 %v802_v22, 256 }
 0x114   :  { %811 = vbcast.lane.b32.xlu1 %v809_v26, 256 }
 0x116   :  { %818 = vbcast.lane.b32.xlu0 %v816_v28, 256 }
 0x118   :  { %825 = vbcast.lane.b32.xlu1 %v823_v32, 256 }
 0x11a   :  { %832 = vbcast.lane.b32.xlu0 %v830_v33, 256 }
 0x11c   :  { %839 = vbcast.lane.b32.xlu1 %v837_v34, 256 }
 0x15c   :  { %v522_v49 = vpop.permute.xlu0 %521 }
 0x15d   :  { %v1580_v57 = vadd.f32 %v522_v49, %v1462_v42 }
 0x15e   :  { %v526_v50 = vpop.permute.xlu1 %525 }
 0x15f   :  { %v1030_v62 = vmul.f32 -1.442695, %v1580_v57 }
 0x160   :  { %v524_v51 = vpop.permute.xlu0 %523 }
 0x161   :  { %v1583_v61 = vadd.f32 %v524_v51, %v1472_v52  ;;  %1216 = vpow2.f32 %v1030_v62  ;;  %v1595_v52 = vadd.f32 %v526_v50, %v1466_v44 }
 0x162   :  { %v528_v41 = vpop.permute.xlu1 %527 }
 0x163   :  { %v1031_v3 = vmul.f32 -1.442695, %v1583_v61  ;;  %v1602_v10 = vadd.f32 %v528_v41, %v1464_v43  ;;  %v1032_v44 = vmul.f32 -1.442695, %v1595_v52 }
 0x164   :  { %v530_v55 = vpop.permute.xlu0 %529 }
 0x165   :  { %v1610_v12 = vadd.f32 %v530_v55, %v1474_v53  ;;  %v1033_v15 = vmul.f32 -1.442695, %v1602_v10 }
 0x166   :  { %v532_v56 = vpop.permute.xlu1 %531 }
 0x167   :  { %v1615_v16 = vadd.f32 %v532_v56, %v1469_v48  ;;  %v1034_v43 = vmul.f32 -1.442695, %v1610_v12 }
 0x168   :  { %v534_v59 = vpop.permute.xlu0 %533 }
 0x169   :  { %v1035_v53 = vmul.f32 -1.442695, %v1615_v16 }
 0x16a   :  { %v536_v58 = vpop.permute.xlu1 %535 }
 0x16b   :  { %v1217_v17 = vpop.eup %1216  ;;  %v1623_v19 = vadd.f32 %v536_v58, %v1479_v60 }
 0x16c   :  { %v538_v63 = vpop.permute.xlu0 %537  ;;  %v633_v24 = vadd.f32 1.0, %v1217_v17 }
 0x16d   :  { %v1587_v0 = vadd.f32 %v538_v63, %v1503_v14  ;;  %v1037_v28 = vmul.f32 -1.442695, %v1623_v19 }
 0x16e   :  { %v540_v4 = vpop.permute.xlu1 %539 }
 0x16f   :  { %v1038_v5 = vmul.f32 -1.442695, %v1587_v0  ;;  %v1592_v6 = vadd.f32 %v540_v4, %v1497_v8 }
 0x170   :  { %v542_v42 = vpop.permute.xlu0 %541 }
 0x171   :  { %1218 = vpow2.f32 %v1038_v5  ;;  %v1039_v36 = vmul.f32 -1.442695, %v1592_v6  ;;  %v1599_v7 = vadd.f32 %v542_v42, %v1511_v25 }
 0x172   :  { %1220 = vpow2.f32 %v1031_v3  ;;  %v544_v14 = vpop.permute.xlu1 %543 }
 0x173   :  { %1222 = vpow2.f32 %v1039_v36  ;;  %v1040_v8 = vmul.f32 -1.442695, %v1599_v7  ;;  %v1606_v11 = vadd.f32 %v544_v14, %v1507_v20  ;;  %v1619_v20 = vadd.f32 %v534_v59, %v1483_v1 }
 0x174   :  { %v546_v27 = vpop.permute.xlu0 %545 }
 0x175   :  { %1224 = vpow2.f32 %v1040_v8  ;;  %v1041_v25 = vmul.f32 -1.442695, %v1606_v11  ;;  %v1036_v48 = vmul.f32 -1.442695, %v1619_v20  ;;  %v1628_v60 = vadd.f32 %v546_v27, %v1522_v35 }
 0x176   :  { %v548_v32 = vpop.permute.xlu1 %547 }
 0x177   :  { %1226 = vpow2.f32 %v1041_v25  ;;  %v1631_v50 = vadd.f32 %v548_v32, %v1516_v29  ;;  %v1042_v55 = vmul.f32 -1.442695, %v1628_v60 }
 0x178   :  { %1228 = vpow2.f32 %v1032_v44  ;;  %v550_v59 = vpop.permute.xlu0 %549 }
 0x179   :  { %1230 = vpow2.f32 %v1033_v15  ;;  %v1043_v62 = vmul.f32 -1.442695, %v1631_v50  ;;  %v1636_v29 = vadd.f32 %v550_v59, %v1535_v54 }
 0x17a   :  { %1232 = vpow2.f32 %v1034_v43  ;;  %v552_v3 = vpop.permute.xlu1 %551 }
 0x17b   :  { %v1219_v18 = vpop.eup %1218  ;;  %v1640_v14 = vadd.f32 %v552_v3, %v1531_v45  ;;  %v1044_v54 = vmul.f32 -1.442695, %v1636_v29 }
 0x17c   :  { %v1221_v21 = vpop.eup %1220  ;;  %v641_v22 = vadd.f32 1.0, %v1219_v18 }
 0x17d   :  { %v1223_v23 = vpop.eup %1222  ;;  %v634_v30 = vadd.f32 1.0, %v1221_v21  ;;  %v1045_v17 = vmul.f32 -1.442695, %v1640_v14 }
 0x17e   :  { %1234 = vrcp.f32 %v641_v22  ;;  %v642_v26 = vadd.f32 1.0, %v1223_v23  ;;  %v784_v59 = vpop.permute.xlu1 %783 }
 0x17f   :  { %v1225_v1 = vpop.eup %1224  ;;  %1236 = vpow2.f32 %v1035_v53 }
 0x180   :  { %1238 = vrcp.f32 %v642_v26  ;;  %v643_v34 = vadd.f32 1.0, %v1225_v1 }
 0x181   :  { %v1227_v33 = vpop.eup %1226  ;;  %1240 = vpow2.f32 %v1036_v48 }
 0x182   :  { %1242 = vrcp.f32 %v633_v24  ;;  %v1229_v49 = vpop.eup %1228  ;;  %v644_v51 = vadd.f32 1.0, %v1227_v33 }
 0x183   :  { %1244 = vpow2.f32 %v1037_v28  ;;  %v1231_v41 = vpop.eup %1230  ;;  %v635_v56 = vadd.f32 1.0, %v1229_v49 }
 0x184   :  { %1246 = vrcp.f32 %v634_v30  ;;  %v1233_v58 = vpop.eup %1232  ;;  %v636_v63 = vadd.f32 1.0, %v1231_v41 }
 0x185   :  { %1248 = vrcp.f32 %v643_v34  ;;  %v637_v42 = vadd.f32 1.0, %v1233_v58 }
 0x186   :  { %1250 = vrcp.f32 %v644_v51 }
 0x187   :  { %1252 = vpow2.f32 %v1042_v55  ;;  %v899_v55 = vld [vmem:[%s1714_s7] sm:$0xff] }
 0x188   :  { %v1235_v35 = vpop.eup %1234  ;;  %1254 = vrcp.f32 %v635_v56  ;;  %1159 = vmatprep.mubr.f32.mxu1 %v899_v55 }
 0x189   :  { %v1237_v4 = vpop.eup %1236  ;;  %713 = vrot.lane.b32.xlu0 %v1235_v35, %s1306_s2  ;;  %1256 = vpow2.f32 %v1043_v62  ;;  %v798_v62 = vpop.permute.xlu1 %797 }
 0x18a   :  { %v1239_v5 = vpop.eup %1238  ;;  %1258 = vrcp.f32 %v636_v63  ;;  %v638_v44 = vadd.f32 1.0, %v1237_v4 }
 0x18b   :  { %v1241_v36 = vpop.eup %1240  ;;  %715 = vrot.lane.b32.xlu1 %v1239_v5, %s1306_s2  ;;  %1260 = vrcp.f32 %v637_v42 }
 0x18c   :  { %v1243_v8 = vpop.eup %1242  ;;  %v639_v43 = vadd.f32 1.0, %v1241_v36  ;;  %1262 = vrcp.f32 %v638_v44 }
 0x18d   :  { %v1245_v25 = vpop.eup %1244  ;;  %697 = vrot.lane.b32.xlu0 %v1243_v8, %s1306_s2  ;;  %1264 = vpow2.f32 %v1044_v54  ;;  %v812_v63 = vpop.permute.xlu1 %811 }
 0x18e   :  { %v1247_v15 = vpop.eup %1246  ;;  %v640_v45 = vadd.f32 1.0, %v1245_v25  ;;  %1266 = vrcp.f32 %v639_v43 }
 0x18f   :  { %699 = vrot.lane.b32.xlu1 %v1247_v15, %s1306_s2  ;;  %v1249_v18 = vpop.eup %1248  ;;  %1268 = vpow2.f32 %v1045_v17 }
 0x190   :  { %v1251_v53 = vpop.eup %1250  ;;  %1270 = vrcp.f32 %v640_v45 }
 0x191   :  { %717 = vrot.lane.b32.xlu0 %v1249_v18, %s1306_s2  ;;  %v1253_v21 = vpop.eup %1252  ;;  %v826_v4 = vpop.permute.xlu1 %825 }
 0x192   :  { %v1255_v22 = vpop.eup %1254  ;;  %v645_v24 = vadd.f32 1.0, %v1253_v21 }
 0x193   :  { %719 = vrot.lane.b32.xlu1 %v1251_v53, %s1306_s2  ;;  %v1257_v23 = vpop.eup %1256 }
 0x194   :  { %v1259_v48 = vpop.eup %1258  ;;  %v646_v27 = vadd.f32 1.0, %v1257_v23  ;;  %1272 = vrcp.f32 %v645_v24 }
 0x195   :  { %701 = vrot.lane.b32.xlu0 %v1255_v22, %s1306_s2  ;;  %v1261_v26 = vpop.eup %1260  ;;  %v840_v42 = vpop.permute.xlu1 %839 }
 0x196   :  { %v1263_v1 = vpop.eup %1262  ;;  %1274 = vrcp.f32 %v646_v27 }
 0x197   :  { %703 = vrot.lane.b32.xlu1 %v1259_v48, %s1306_s2  ;;  %v1265_v28 = vpop.eup %1264 }
 0x198   :  { %v1267_v30 = vpop.eup %1266  ;;  %v647_v34 = vadd.f32 1.0, %v1265_v28 }
 0x199   :  { %705 = vrot.lane.b32.xlu0 %v1261_v26, %s1306_s2  ;;  %v1269_v32 = vpop.eup %1268 }
 0x19a   :  { %v1271_v33 = vpop.eup %1270  ;;  %v648_v49 = vadd.f32 1.0, %v1269_v32  ;;  %1276 = vrcp.f32 %v647_v34 }
 0x19b   :  { %707 = vrot.lane.b32.xlu1 %v1263_v1, %s1306_s2 }
 0x19c   :  { %1278 = vrcp.f32 %v648_v49 }
 0x19d   :  { %709 = vrot.lane.b32.xlu0 %v1267_v30, %s1306_s2 }
 0x19e   :  { %v1273_v51 = vpop.eup %1272 }
 0x19f   :  { %711 = vrot.lane.b32.xlu1 %v1271_v33, %s1306_s2 }
 0x1a0   :  { %v1275_v41 = vpop.eup %1274 }
 0x1a1   :  { %846 = vbcast.lane.b32.xlu0 %v1567_v37, 256 }
 0x1a3   :  { %853 = vbcast.lane.b32.xlu1 %v1569_v38, 256  ;;  %v977_v38 = vsel %vm976_vm4, %v1488_v2, 0.0 }
 0x1a4   :  { %v1277_v56 = vpop.eup %1276 }
 0x1a5   :  { %721 = vrot.lane.b32.xlu0 %v1273_v51, %s1306_s2 }
 0x1a6   :  { %v1279_v37 = vpop.eup %1278 }
 0x1a7   :  { %723 = vrot.lane.b32.xlu1 %v1275_v41, %s1306_s2 }
 0x1a9   :  { %860 = vbcast.lane.b32.xlu0 %v1571_v40, 256  ;;  %v980_v40 = vsel %vm976_vm4, %v1529_v39, 0.0 }
 0x1ab   :  { %867 = vbcast.lane.b32.xlu1 %v1573_v46, 256  ;;  %v777_v46 = vpop.permute.xlu0 %776 }
 0x1ad   :  { %725 = vrot.lane.b32.xlu0 %v1277_v56, %s1306_s2 }
 0x1af   :  { %727 = vrot.lane.b32.xlu1 %v1279_v37, %s1306_s2  ;;  %v791_v58 = vpop.permute.xlu0 %790 }
 0x1b1   :  { %874 = vbcast.lane.b32.xlu0 %v1575_v31, 256 }
 0x1b3   :  { %881 = vbcast.lane.b32.xlu1 %v1577_v47, 256  ;;  %v805_v35 = vpop.permute.xlu0 %804 }
 0x1b7   :  { %v819_v3 = vpop.permute.xlu0 %818 }
 0x1bb   :  { %v833_v5 = vpop.permute.xlu0 %832 }
 0x1d0   :  { %978 = vadd.xlane.f32.xlu0 %v977_v38 }
 0x1d7   :  { %981 = vadd.xlane.f32.xlu1 %v980_v40 }
 0x1fb   :  { %v714_v31 = vpop.permute.xlu0 %713 }
 0x1fd   :  { %v716_v36 = vpop.permute.xlu1 %715 }
 0x1fe   :  { %v754_v27 = vmul.f32 %v716_v36, %v1592_v6 }
 0x1ff   :  { %v698_v47 = vpop.permute.xlu0 %697 }
 0x200   :  { %v745_v8 = vmul.f32 %v698_v47, %v1580_v57  ;;  %v892_v34 = vmul.f32 %v840_v42, %v754_v27  ;;  %v900_v47 = vld [vmem:[%s1714_s7 + $0x8] sm:$0xff]  ;;  %s1280_s7 = scalar_lea.vmem %s1001_s16, 256 }
 0x201   :  { %v700_v2 = vpop.permute.xlu1 %699  ;;  %p1281_p0 = scmp.ne.s32.totalorder %s1001_s16, %s1280_s7  ;;  %p1286_p2 = scmp.lt.s32.totalorder %s1280_s7, %s1280_s7 }
 0x202   :  { %v746_v44 = vmul.f32 %v700_v2, %v1583_v61  ;;  %v883_v25 = vmul.f32 %v777_v46, %v745_v8 }
 0x203   :  { %v718_v39 = vpop.permute.xlu0 %717  ;;  %p1287_p3 = por %p1286_p2, %p1285_p1 }
 0x204   :  { %v884_v54 = vmul.f32 %v784_v59, %v746_v44  ;;  %v755_v56 = vmul.f32 %v718_v39, %v1599_v7 }
 0x205   :  { %v720_v15 = vpop.permute.xlu1 %719  ;;  %p1288_p4 = pnand %p1287_p3, %p1281_p0 }
 0x206   :  { %v1174_v43 = vpack.c.bf16 %v884_v54, %v883_v25  ;;  %v756_v41 = vmul.f32 %v720_v15, %v1606_v11 }
 0x207   :  { %v702_v17 = vpop.permute.xlu0 %701 }
 0x208   :  { %v747_v18 = vmul.f32 %v702_v17, %v1595_v52  ;;  %1175 = vmatprep.subr.bf16.mxu1 %v1174_v43 }
 0x209   :  { %v704_v45 = vpop.permute.xlu1 %703  ;;  %1177 = vmatpush3.bf16.msra.mxu1 %v1174_v43 }
 0x20a   :  { %v748_v53 = vmul.f32 %v704_v45, %v1602_v10  ;;  %v885_v22 = vmul.f32 %v791_v58, %v747_v18  ;;  %v753_v10 = vmul.f32 %v714_v31, %v1587_v0 }
 0x20b   :  { %v706_v21 = vpop.permute.xlu0 %705 }
 0x20c   :  { %v886_v23 = vmul.f32 %v798_v62, %v748_v53  ;;  %v749_v57 = vmul.f32 %v706_v21, %v1610_v12  ;;  %v891_v6 = vmul.f32 %v833_v5, %v753_v10 }
 0x20d   :  { %v708_v48 = vpop.permute.xlu1 %707 }
 0x20e   :  { %v750_v61 = vmul.f32 %v708_v48, %v1615_v16  ;;  %v1178_v24 = vpack.c.bf16 %v886_v23, %v885_v22  ;;  %v887_v1 = vmul.f32 %v805_v35, %v749_v57  ;;  %v1190_v0 = vpack.c.bf16 %v892_v34, %v891_v6 }
 0x20f   :  { %v710_v26 = vpop.permute.xlu0 %709 }
 0x210   :  { %v888_v28 = vmul.f32 %v812_v63, %v750_v61  ;;  %v751_v52 = vmul.f32 %v710_v26, %v1619_v20  ;;  %1179 = vmatprep.subr.bf16.mxu1 %v1178_v24 }
 0x211   :  { %v712_v30 = vpop.permute.xlu1 %711  ;;  %1181 = vmatpush3.bf16.msra.mxu1 %v1178_v24 }
 0x212   :  { %v752_v32 = vmul.f32 %v712_v30, %v1623_v19  ;;  %v1182_v33 = vpack.c.bf16 %v888_v28, %v887_v1  ;;  %v889_v49 = vmul.f32 %v819_v3, %v751_v52 }
 0x213   :  { %v847_v12 = vpop.permute.xlu0 %846 }
 0x214   :  { %v890_v16 = vmul.f32 %v826_v4, %v752_v32  ;;  %1183 = vmatprep.subr.bf16.mxu1 %v1182_v33  ;;  %v893_v19 = vmul.f32 %v847_v12, %v755_v56 }
 0x215   :  { %v854_v51 = vpop.permute.xlu1 %853  ;;  %1185 = vmatpush3.bf16.msra.mxu1 %v1182_v33 }
 0x216   :  { %v1186_v55 = vpack.c.bf16 %v890_v16, %v889_v49  ;;  %v894_v37 = vmul.f32 %v854_v51, %v756_v41 }
 0x217   :  { %v722_v20 = vpop.permute.xlu0 %721 }
 0x218   :  { %1187 = vmatprep.subr.bf16.mxu1 %v1186_v55  ;;  %v1194_v46 = vpack.c.bf16 %v894_v37, %v893_v19  ;;  %v757_v59 = vmul.f32 %v722_v20, %v1628_v60 }
 0x219   :  { %v724_v38 = vpop.permute.xlu1 %723  ;;  %1189 = vmatpush3.bf16.msra.mxu1 %v1186_v55 }
 0x21a   :  { %1191 = vmatprep.subr.bf16.mxu1 %v1190_v0  ;;  %v758_v58 = vmul.f32 %v724_v38, %v1631_v50 }
 0x21b   :  { %v861_v40 = vpop.permute.xlu0 %860 }
 0x21c   :  { %v895_v11 = vmul.f32 %v861_v40, %v757_v59 }
 0x21d   :  { %v868_v62 = vpop.permute.xlu1 %867  ;;  %1193 = vmatpush3.bf16.msra.mxu1 %v1190_v0 }
 0x21e   :  { %v896_v35 = vmul.f32 %v868_v62, %v758_v58  ;;  %1195 = vmatprep.subr.bf16.mxu1 %v1194_v46 }
 0x21f   :  { %v726_v63 = vpop.permute.xlu0 %725 }
 0x220   :  { %v1198_v7 = vpack.c.bf16 %v896_v35, %v895_v11  ;;  %v759_v5 = vmul.f32 %v726_v63, %v1636_v29 }
 0x221   :  { %v728_v3 = vpop.permute.xlu1 %727  ;;  %1197 = vmatpush3.bf16.msra.mxu1 %v1194_v46 }
 0x222   :  { %1199 = vmatprep.subr.bf16.mxu1 %v1198_v7  ;;  %v760_v42 = vmul.f32 %v728_v3, %v1640_v14 }
 0x223   :  { %v875_v4 = vpop.permute.xlu0 %874 }
 0x224   :  { %v897_v60 = vmul.f32 %v875_v4, %v759_v5 }
 0x225   :  { %v882_v31 = vpop.permute.xlu1 %881  ;;  %1201 = vmatpush3.bf16.msra.mxu1 %v1198_v7 }
 0x226   :  { %v898_v36 = vmul.f32 %v882_v31, %v760_v42 }
 0x228   :  { %v1202_v50 = vpack.c.bf16 %v898_v36, %v897_v60 }
 0x22a   :  { %1203 = vmatprep.subr.bf16.mxu1 %v1202_v50 }
 0x22b   :  { %1205 = vmatpush3.bf16.msra.mxu1 %v1202_v50 }
 0x22e   :  { %1160 = vmatmul.mubr.f32.vlgmr.msra.gmra.mrb[16].mxu1 %v900_v47 }
 0x25d   :  { %v979_v2 = vpop.xlane.xlu0 %978 }
 0x25e   :  { %vm983_vm6 = vcmp.gt.f32.partialorder %v979_v2, 0.0 }
 0x264   :  { %v982_v8 = vpop.xlane.xlu1 %981 }
 0x265   :  { %vm984_vm5 = vcmp.gt.f32.partialorder %v982_v8, 0.0 }
 0x301   :  { %v1161_v44 = vpop.f32.mrb[16].mxu1 }
 0x302   :  { %v990_v29 = vsel %vm984_vm5, %v1161_v44, %v1394_v13  ;;  %v967_v14 = vpop.f32.mrb[17].mxu1 }
 0x303   :  { %v992_v39 = vadd.f32 %v990_v29, %v1394_v13  ;;  %v989_v25 = vsel %vm983_vm6, %v967_v14, %v1380_v9 }
 0x304   :  { %v991_v54 = vadd.f32 %v989_v25, %v1380_v9 }
 0x305   :  { %994 = vst.msk [vmem:[#allocation2 + $0x8] sm:$0xff] %vm63_vm1, %v992_v39 }
 0x306   :  { %993 = vst.msk [vmem:[#allocation2] sm:$0xff] %vm63_vm1, %v991_v54 }
 0x307   :  { %1291 = shalt.err (!%p1288_p4)
}
 0x308   :  { %s1292_s19 = scalar_lea.hbm %s1715_s8, 256 }
 0x309   :  { %p1293_p5 = scmp.ne.s32.totalorder %s1715_s8, %s1292_s19  ;;  %p1296_p6 = scmp.lt.u32.totalorder %s1292_s19, %s1715_s8 }
 0x30b   :  { %p1298_p7 = pnand %p1296_p6, %p1293_p5 }
 0x30d   :  { %1301 = shalt.err (!%p1298_p7)
}
 0x30e   :  { %s1308_s4 = smov 128   ;;  %s1309_s23 = smov 8  }
 0x30f   :  { %1006 = dma.vmem_to_hbm [thread:$0]  %s1001_s16, 256, %s1715_s8, [#allocation3], %s1308_s4, %s1308_s4, %s1309_s23  }
 0x310   :  { %1302 = dma.done.wait [#allocation3], 256  }
 0x311   :  { %1303 = vsyncadd [#allocation3], 4294967040 }
 0x312   :  { %1010 = vsyncpa [#allocation3], 1 }

</bundles_post_ra>
